<compile_context>
chip_gen: v7x
topology: tpu7x:2x2x1
jax: 0.10.0
libtpu: 0.0.40
codegen_flags: <defaults>
</compile_context>

<pallas_src>
import jax
import jax.numpy as jnp
from jax.experimental import pallas as pl
from jax.experimental.pallas import tpu as pltpu


def _leaky(h):
    # nn.LeakyReLU default negative_slope = 0.01; max(h, 0.01*h) == leaky_relu(h)
    return jnp.maximum(h, 0.01 * h)


def critic_block_kernel(state_ref, w1raw_ref, b1_ref, w2_ref, b2_ref,
                        w3_ref, b3_ref, w4_ref, out_ref):
    # state_ref: (PB, p, dim) block of problems (f32; channel 0 = node index)
    # w1raw_ref: (dim-1, 4E) bf16, block weights [c@w1c | c@w1p | c@w1n | extra@w1e]
    # w2/w3:     (E, E) bf16; biases (1, E) f32; w4_ref: (1, E) f32 row (no bias)
    # out_ref:   (1, 1, PB) per-grid-step block (lane-dense row)
    pb, p, dim = state_ref.shape
    e = b1_ref.shape[1]          # lane-padded embedding width (multiple of 128)
    r = pb * p

    st = state_ref[...]                                       # (PB, p, dim) f32
    idx = st[..., 0:1].astype(jnp.int32)                      # node ids (>= 0)
    raw = st[..., 1:].astype(jnp.bfloat16)                    # coords | extra

    # ---- Layer 1, part A: one fused bf16 matmul for all four weight groups ----
    # NOTE: for p % 8 != 0 the (PB,p,.) <-> (PB*p,.) reshapes are still correct
    # but materialize VMEM copies (perf only).
    proj = jnp.dot(raw.reshape(r, dim - 1), w1raw_ref[...],
                   preferred_element_type=jnp.float32)        # (r, 4E) f32
    g = proj[:, :3 * e].reshape(pb, p, 3 * e).astype(jnp.bfloat16)  # to be gathered
    he = proj[:, 3 * e:]                                      # extra @ w1e (no gather)

    # ---- Node-index gather as a bf16 one-hot batched matmul (exact: 0/1) ----
    src = jax.lax.broadcasted_iota(jnp.int32, (pb, p, p), 2)
    onehot = (src == idx).astype(jnp.bfloat16)                # (PB, p, p)
    gat = jnp.einsum('bij,bjk->bik', onehot, g,
                     preferred_element_type=jnp.float32)      # (PB, p, 3E) f32

    # ---- prev / next tour neighbours: cyclic sublane rolls (XLU, ~free) ----
    h1 = (gat[..., :e]
          + pltpu.roll(gat[..., e:2 * e], shift=1, axis=1)        # coords_prev @ w1p
          + pltpu.roll(gat[..., 2 * e:], shift=p - 1, axis=1))    # coords_next @ w1n

    h = _leaky(h1.reshape(r, e) + he + b1_ref[...])
    h = _leaky(jnp.dot(h.astype(jnp.bfloat16), w2_ref[...],
                       preferred_element_type=jnp.float32) + b2_ref[...])
    h = _leaky(jnp.dot(h.astype(jnp.bfloat16), w3_ref[...],
                       preferred_element_type=jnp.float32) + b3_ref[...])

    # Per-problem mean BEFORE the (bias-free, linear) final layer, then one tiny
    # f32 projection producing a lane-dense (1, PB) row for this block.
    pooled = jnp.mean(h.reshape(pb, p, e), axis=1)            # (PB, E)
    row = jnp.dot(w4_ref[...], pooled.T,
                  preferred_element_type=jnp.float32)         # (1, PB)
    out_ref[...] = row.reshape(1, 1, pb)


def init_params(key, embed_dim, c=13):
    """Deterministic params mirroring CVRPCritic.__init__/init_weights:
    nn.init.kaiming_uniform_ (a=0 -> bound = sqrt(6/fan_in)) on every Linear
    weight, biases filled with 0.01, final (embed_dim -> 1) layer has no bias."""
    def kaiming_uniform(k, out_dim, in_dim):
        bound = jnp.sqrt(6.0 / in_dim)
        return jax.random.uniform(k, (out_dim, in_dim), jnp.float32, -bound, bound)

    k1, k2, k3, k4 = jax.random.split(key, 4)
    w1 = kaiming_uniform(k1, embed_dim, c)
    b1 = jnp.full((1, embed_dim), 0.01, jnp.float32)
    w2 = kaiming_uniform(k2, embed_dim, embed_dim)
    b2 = jnp.full((1, embed_dim), 0.01, jnp.float32)
    w3 = kaiming_uniform(k3, embed_dim, embed_dim)
    b3 = jnp.full((1, embed_dim), 0.01, jnp.float32)
    w4 = kaiming_uniform(k4, 1, embed_dim)                    # final layer, bias=False
    # w1/w2/w3 pre-transposed to (in, out); w4 kept as a (1, emb) row.
    return (w1.T, b1, w2.T, b2, w3.T, b3, w4)


def _pick_block(n, p, dim, e, requested):
    """Generation-aware problems-per-block and VMEM limit."""
    try:
        info = pltpu.get_tpu_info()
        cap = int(getattr(info, "vmem_capacity_bytes", 64 * 1024 * 1024))
    except Exception:
        cap = 64 * 1024 * 1024                     # conservative fallback (v7x-sized)
    vmem_limit = min((cap * 3) // 4, 96 * 1024 * 1024)   # 96 MiB on v5e/v6e, 48 MiB on v7x
    vmem_limit = max(vmem_limit, 32 * 1024 * 1024)

    if requested is not None:
        pb = max(8, -(-int(requested) // 8) * 8)   # round up to a multiple of 8
        return pb, int(vmem_limit)

    budget = int(vmem_limit * 0.45)                # headroom for weights / temporaries
    per_problem = (2 * p * dim * 4                 # double-buffered state block
                   + 2 * p * p                     # bf16 one-hot
                   + p * 4 * e * 6                 # layer-1 projection (f32 + bf16 copy)
                   + p * 3 * e * 4                 # gathered projections
                   + p * e * 4 * 5)                # h copies across layers / pooled
    pb = max(8, budget // max(per_problem, 1))
    pb = max(8, (pb // 8) * 8)
    if pb >= 256:
        pb = (pb // 128) * 128                     # lane-align the output row when cheap
    pb = min(pb, max(8, -(-n // 8) * 8))
    return pb, int(vmem_limit)


def cvrp_critic_forward(state, params, *, problems_per_block=None):
    """Equivalent of CVRPCritic.forward.  state: (n, p, dim) -> (n,) float32."""
    n, p, dim = state.shape
    w1t, b1, w2t, b2, w3t, b3, w4row = params
    emb = w2t.shape[0]
    E = -(-emb // 128) * 128                       # lane-pad the embedding width

    # ---- weight packing (zero padding keeps numerics exactly identical) ----
    w1c, w1p_, w1n_, w1e_ = w1t[0:2], w1t[2:4], w1t[4:6], w1t[6:]
    w1raw = jnp.zeros((dim - 1, 4 * E), jnp.float32)
    w1raw = w1raw.at[0:2, 0:emb].set(w1c)                  # coords -> w1c
    w1raw = w1raw.at[0:2, E:E + emb].set(w1p_)             # coords -> w1p
    w1raw = w1raw.at[0:2, 2 * E:2 * E + emb].set(w1n_)     # coords -> w1n
    if dim > 3:
        w1raw = w1raw.at[2:, 3 * E:3 * E + emb].set(w1e_)  # extra  -> w1e
    w1raw = w1raw.astype(jnp.bfloat16)

    pad_bias = lambda b: jnp.pad(b, ((0, 0), (0, E - emb))).astype(jnp.float32)
    pad_sq = lambda w: jnp.pad(w, ((0, E - emb), (0, E - emb))).astype(jnp.bfloat16)
    b1p, b2p, b3p = pad_bias(b1), pad_bias(b2), pad_bias(b3)
    w2p, w3p = pad_sq(w2t), pad_sq(w3t)
    w4p = jnp.pad(w4row, ((0, 0), (0, E - emb))).astype(jnp.float32)

    # ---- block size / VMEM limit (generation-aware) ----
    pb, vmem_limit = _pick_block(n, p, dim, E, problems_per_block)
    n_blocks = -(-n // pb)
    n_pad = n_blocks * pb

    # State stays f32 end-to-end: the node-index channel rides inside it.
    state_p = state.astype(jnp.float32)
    if n_pad != n:
        state_p = jnp.concatenate(
            [state_p, jnp.zeros((n_pad - n, p, dim), jnp.float32)], axis=0)

    weights = (w1raw, b1p, w2p, b2p, w3p, b3p, w4p)
    in_specs = [pl.BlockSpec((pb, p, dim), lambda i: (i, 0, 0))]
    in_specs += [pl.BlockSpec(w.shape, lambda i: (0, 0)) for w in weights]  # VMEM-resident

    out = pl.pallas_call(
        critic_block_kernel,
        out_shape=jax.ShapeDtypeStruct((n_blocks, 1, pb), jnp.float32),
        grid=(n_blocks,),
        in_specs=in_specs,
        # Per-step output block -> the grid axis is legally "parallel" (2 TCs on v7x).
        out_specs=pl.BlockSpec((1, 1, pb), lambda i: (i, 0, 0)),
        compiler_params=pltpu.CompilerParams(
            dimension_semantics=("parallel",),
            vmem_limit_bytes=vmem_limit,
        ),
    )(state_p, *weights)

    return out.reshape(-1)[:n]


def cvrp_critic_reference(state, params):
    """Pure-JAX reference matching the PyTorch forward (for validation)."""
    n, p, dim = state.shape
    w1t, b1, w2t, b2, w3t, b3, w4row = params
    x = state[..., 0:1]
    coords = state[..., 1:3]
    extra = state[..., 3:]
    idx = jnp.broadcast_to(x.astype(jnp.int32), coords.shape)
    cg = jnp.take_along_axis(coords, idx, axis=1)
    cp = jnp.concatenate([cg[:, -1:, :], cg[:, :-1, :]], axis=1)
    cn = jnp.concatenate([cg[:, 1:, :], cg[:, :1, :]], axis=1)
    feat = jnp.concatenate([cg, cp, cn, extra], axis=-1).reshape(n * p, -1)
    lrelu = lambda t: jnp.where(t >= 0, t, 0.01 * t)
    h = lrelu(feat @ w1t + b1)
    h = lrelu(h @ w2t + b2)
    h = lrelu(h @ w3t + b3)
    q = (h @ w4row.T).reshape(n, p)
    return q.mean(axis=-1)


if __name__ == "__main__":
    key = jax.random.PRNGKey(0)
    n_problems, problem_dim, dim = 20, 8, 10     # dim-3 extra feats => MLP input c=13
    embed_dim = 32

    k_idx, k_coord, k_extra, k_param = jax.random.split(key, 4)
    node_idx = jax.random.randint(k_idx, (n_problems, problem_dim, 1),
                                  0, problem_dim).astype(jnp.float32)
    coords = jax.random.uniform(k_coord, (n_problems, problem_dim, 2), jnp.float32)
    extra = jax.random.uniform(k_extra, (n_problems, problem_dim, dim - 3), jnp.float32)
    state = jnp.concatenate([node_idx, coords, extra], axis=-1)   # (20, 8, 10)

    params = init_params(k_param, embed_dim, c=dim + 3)

    # problems_per_block=8 -> grid=(3,) with 4 padded problems (exercises tiling + padding).
    out = cvrp_critic_forward(state, params, problems_per_block=8)
    out = jax.block_until_ready(out)

    ref = cvrp_critic_reference(state, params)
    assert out.shape == (n_problems,) and out.dtype == jnp.float32
    # bf16 MXU operands with f32 accumulation -> relaxed (but structural-bug-catching) tolerance.
    max_err = float(jnp.max(jnp.abs(out - ref)))
    assert bool(jnp.allclose(out, ref, rtol=5e-2, atol=5e-2)), (max_err, out, ref)
    print("KERNEL_OK")
</pallas_src>

<mosaic_0001>
module attributes {stable_mosaic.version = 11 : i64} {
  func.func @critic_block_kernel(%arg0: i32, %arg1: memref<8x8x10xf32, #tpu.memory_space<vmem>>, %arg2: memref<9x512xbf16, #tpu.memory_space<vmem>>, %arg3: memref<1x128xf32, #tpu.memory_space<vmem>>, %arg4: memref<128x128xbf16, #tpu.memory_space<vmem>>, %arg5: memref<1x128xf32, #tpu.memory_space<vmem>>, %arg6: memref<128x128xbf16, #tpu.memory_space<vmem>>, %arg7: memref<1x128xf32, #tpu.memory_space<vmem>>, %arg8: memref<1x128xf32, #tpu.memory_space<vmem>>, %arg9: memref<1x1x8xf32, #tpu.memory_space<vmem>>) attributes {dimension_semantics = [#tpu.dimension_semantics<parallel>], iteration_bounds = array<i64: 3>, scalar_prefetch = 0 : i64, scratch_operands = 0 : i64, tpu.core_type = #tpu.core_type<tc>, window_params = [{transform_indices = @transform_0, window_bounds = array<i64: 8, 8, 10>}, {pipeline_mode = #tpu.pipeline_mode<synchronous>, transform_indices = @transform_1, window_bounds = array<i64: 9, 512>}, {pipeline_mode = #tpu.pipeline_mode<synchronous>, transform_indices = @transform_2, window_bounds = array<i64: 1, 128>}, {pipeline_mode = #tpu.pipeline_mode<synchronous>, transform_indices = @transform_3, window_bounds = array<i64: 128, 128>}, {pipeline_mode = #tpu.pipeline_mode<synchronous>, transform_indices = @transform_4, window_bounds = array<i64: 1, 128>}, {pipeline_mode = #tpu.pipeline_mode<synchronous>, transform_indices = @transform_5, window_bounds = array<i64: 128, 128>}, {pipeline_mode = #tpu.pipeline_mode<synchronous>, transform_indices = @transform_6, window_bounds = array<i64: 1, 128>}, {pipeline_mode = #tpu.pipeline_mode<synchronous>, transform_indices = @transform_7, window_bounds = array<i64: 1, 128>}, {transform_indices = @transform_8, window_bounds = array<i64: 1, 1, 8>}]} {
    %c0 = arith.constant 0 : index
    %c0_0 = arith.constant 0 : index
    %c0_1 = arith.constant 0 : index
    %0 = vector.load %arg1[%c0, %c0_0, %c0_1] : memref<8x8x10xf32, #tpu.memory_space<vmem>>, vector<8x8x10xf32>
    %1 = vector.extract_strided_slice %0 {offsets = [0, 0, 0], sizes = [8, 8, 1], strides = [1, 1, 1]} : vector<8x8x10xf32> to vector<8x8x1xf32>
    %2 = arith.fptosi %1 : vector<8x8x1xf32> to vector<8x8x1xi32>
    %3 = vector.extract_strided_slice %0 {offsets = [0, 0, 1], sizes = [8, 8, 9], strides = [1, 1, 1]} : vector<8x8x10xf32> to vector<8x8x9xf32>
    %4 = arith.truncf %3 : vector<8x8x9xf32> to vector<8x8x9xbf16>
    %5 = vector.shape_cast %4 : vector<8x8x9xbf16> to vector<64x9xbf16>
    %c0_2 = arith.constant 0 : index
    %c0_3 = arith.constant 0 : index
    %6 = vector.load %arg2[%c0_2, %c0_3] : memref<9x512xbf16, #tpu.memory_space<vmem>>, vector<9x512xbf16>
    %cst = arith.constant dense<0.000000e+00> : vector<64x512xf32>
    %7 = tpu.matmul %5, %6, %cst {dimension_numbers = #tpu.dot_dimension_numbers<[1], [0], [0], [1], [0, 0, 1, 1], [], []>} : vector<64x9xbf16>, vector<9x512xbf16>, vector<64x512xf32> -> vector<64x512xf32>
    %8 = vector.extract_strided_slice %7 {offsets = [0, 0], sizes = [64, 384], strides = [1, 1]} : vector<64x512xf32> to vector<64x384xf32>
    %9 = vector.shape_cast %8 : vector<64x384xf32> to vector<8x8x384xf32>
    %10 = arith.truncf %9 : vector<8x8x384xf32> to vector<8x8x384xbf16>
    %11 = vector.extract_strided_slice %7 {offsets = [0, 384], sizes = [64, 128], strides = [1, 1]} : vector<64x512xf32> to vector<64x128xf32>
    %12 = tpu.iota {dimensions = array<i32: 2>} : vector<8x8x8xi32>
    %13 = vector.broadcast %2 : vector<8x8x1xi32> to vector<8x8x8xi32>
    %14 = arith.cmpi eq, %12, %13 : vector<8x8x8xi32>
    %15 = arith.extui %14 : vector<8x8x8xi1> to vector<8x8x8xi32>
    %16 = arith.sitofp %15 : vector<8x8x8xi32> to vector<8x8x8xf32>
    %17 = arith.truncf %16 : vector<8x8x8xf32> to vector<8x8x8xbf16>
    "tpu.trace_start"() <{level = 10 : i32, message = "bij,bjk->bik"}> : () -> ()
    %cst_4 = arith.constant dense<0.000000e+00> : vector<8x8x384xf32>
    %18 = tpu.matmul %17, %10, %cst_4 {dimension_numbers = #tpu.dot_dimension_numbers<[2], [1], [1], [2], [0, 0, 0, 1, 1, 2], [0], [0]>} : vector<8x8x8xbf16>, vector<8x8x384xbf16>, vector<8x8x384xf32> -> vector<8x8x384xf32>
    "tpu.trace_stop"() : () -> ()
    %19 = vector.extract_strided_slice %18 {offsets = [0, 0, 0], sizes = [8, 8, 128], strides = [1, 1, 1]} : vector<8x8x384xf32> to vector<8x8x128xf32>
    %20 = vector.extract_strided_slice %18 {offsets = [0, 0, 128], sizes = [8, 8, 128], strides = [1, 1, 1]} : vector<8x8x384xf32> to vector<8x8x128xf32>
    %c1_i32 = arith.constant 1 : i32
    %21 = tpu.dynamic_rotate %20 by %c1_i32 dim 1 : vector<8x8x128xf32>, i32 -> vector<8x8x128xf32>
    %22 = arith.addf %19, %21 : vector<8x8x128xf32>
    %23 = vector.extract_strided_slice %18 {offsets = [0, 0, 256], sizes = [8, 8, 128], strides = [1, 1, 1]} : vector<8x8x384xf32> to vector<8x8x128xf32>
    %c7_i32 = arith.constant 7 : i32
    %24 = tpu.dynamic_rotate %23 by %c7_i32 dim 1 : vector<8x8x128xf32>, i32 -> vector<8x8x128xf32>
    %25 = arith.addf %22, %24 : vector<8x8x128xf32>
    %26 = vector.shape_cast %25 : vector<8x8x128xf32> to vector<64x128xf32>
    %27 = arith.addf %26, %11 : vector<64x128xf32>
    %c0_5 = arith.constant 0 : index
    %c0_6 = arith.constant 0 : index
    %28 = vector.load %arg3[%c0_5, %c0_6] : memref<1x128xf32, #tpu.memory_space<vmem>>, vector<1x128xf32>
    %29 = vector.broadcast %28 : vector<1x128xf32> to vector<64x128xf32>
    %30 = arith.addf %27, %29 : vector<64x128xf32>
    %cst_7 = arith.constant 0.00999999977 : f32
    %31 = vector.broadcast %cst_7 : f32 to vector<64x128xf32>
    %32 = arith.mulf %31, %30 : vector<64x128xf32>
    %33 = arith.maximumf %30, %32 : vector<64x128xf32>
    %34 = arith.truncf %33 : vector<64x128xf32> to vector<64x128xbf16>
    %c0_8 = arith.constant 0 : index
    %c0_9 = arith.constant 0 : index
    %35 = vector.load %arg4[%c0_8, %c0_9] : memref<128x128xbf16, #tpu.memory_space<vmem>>, vector<128x128xbf16>
    %cst_10 = arith.constant dense<0.000000e+00> : vector<64x128xf32>
    %36 = tpu.matmul %34, %35, %cst_10 {dimension_numbers = #tpu.dot_dimension_numbers<[1], [0], [0], [1], [0, 0, 1, 1], [], []>} : vector<64x128xbf16>, vector<128x128xbf16>, vector<64x128xf32> -> vector<64x128xf32>
    %c0_11 = arith.constant 0 : index
    %c0_12 = arith.constant 0 : index
    %37 = vector.load %arg5[%c0_11, %c0_12] : memref<1x128xf32, #tpu.memory_space<vmem>>, vector<1x128xf32>
    %38 = vector.broadcast %37 : vector<1x128xf32> to vector<64x128xf32>
    %39 = arith.addf %36, %38 : vector<64x128xf32>
    %cst_13 = arith.constant 0.00999999977 : f32
    %40 = vector.broadcast %cst_13 : f32 to vector<64x128xf32>
    %41 = arith.mulf %40, %39 : vector<64x128xf32>
    %42 = arith.maximumf %39, %41 : vector<64x128xf32>
    %43 = arith.truncf %42 : vector<64x128xf32> to vector<64x128xbf16>
    %c0_14 = arith.constant 0 : index
    %c0_15 = arith.constant 0 : index
    %44 = vector.load %arg6[%c0_14, %c0_15] : memref<128x128xbf16, #tpu.memory_space<vmem>>, vector<128x128xbf16>
    %cst_16 = arith.constant dense<0.000000e+00> : vector<64x128xf32>
    %45 = tpu.matmul %43, %44, %cst_16 {dimension_numbers = #tpu.dot_dimension_numbers<[1], [0], [0], [1], [0, 0, 1, 1], [], []>} : vector<64x128xbf16>, vector<128x128xbf16>, vector<64x128xf32> -> vector<64x128xf32>
    %c0_17 = arith.constant 0 : index
    %c0_18 = arith.constant 0 : index
    %46 = vector.load %arg7[%c0_17, %c0_18] : memref<1x128xf32, #tpu.memory_space<vmem>>, vector<1x128xf32>
    %47 = vector.broadcast %46 : vector<1x128xf32> to vector<64x128xf32>
    %48 = arith.addf %45, %47 : vector<64x128xf32>
    %cst_19 = arith.constant 0.00999999977 : f32
    %49 = vector.broadcast %cst_19 : f32 to vector<64x128xf32>
    %50 = arith.mulf %49, %48 : vector<64x128xf32>
    %51 = arith.maximumf %48, %50 : vector<64x128xf32>
    %52 = vector.shape_cast %51 : vector<64x128xf32> to vector<8x8x128xf32>
    %cst_20 = arith.constant dense<0.000000e+00> : vector<8x128xf32>
    %53 = vector.multi_reduction <add>, %52, %cst_20 [1] : vector<8x8x128xf32> to vector<8x128xf32>
    %cst_21 = arith.constant 8.000000e+00 : f32
    %54 = vector.broadcast %cst_21 : f32 to vector<8x128xf32>
    %55 = arith.divf %53, %54 : vector<8x128xf32>
    %c0_22 = arith.constant 0 : index
    %c0_23 = arith.constant 0 : index
    %56 = vector.load %arg8[%c0_22, %c0_23] : memref<1x128xf32, #tpu.memory_space<vmem>>, vector<1x128xf32>
    %57 = tpu.transpose %55, [1, 0] : vector<8x128xf32> -> vector<128x8xf32>
    %cst_24 = arith.constant dense<0.000000e+00> : vector<1x8xf32>
    %58 = tpu.matmul %56, %57, %cst_24 {dimension_numbers = #tpu.dot_dimension_numbers<[1], [0], [0], [1], [0, 0, 1, 1], [], []>} : vector<1x128xf32>, vector<128x8xf32>, vector<1x8xf32> -> vector<1x8xf32>
    %59 = vector.shape_cast %58 : vector<1x8xf32> to vector<1x1x8xf32>
    %c0_25 = arith.constant 0 : index
    %c0_26 = arith.constant 0 : index
    %c0_27 = arith.constant 0 : index
    %60 = vector.load %arg9[%c0_25, %c0_26, %c0_27] : memref<1x1x8xf32, #tpu.memory_space<vmem>>, vector<1x1x8xf32>
    tpu.vector_store %arg9[%c0_25, %c0_26, %c0_27], %59 {strides = array<i32>} : memref<1x1x8xf32, #tpu.memory_space<vmem>>, vector<1x1x8xf32>,
    return
  }
  func.func @transform_0(%arg0: i32) -> (i32, i32, i32) {
    %c0_i32 = arith.constant 0 : i32
    %c0_i32_0 = arith.constant 0 : i32
    %c0_i32_1 = arith.constant 0 : i32
    return %arg0, %c0_i32, %c0_i32_0 : i32, i32, i32
  }
  func.func @transform_1(%arg0: i32) -> (i32, i32) {
    %c0_i32 = arith.constant 0 : i32
    %c0_i32_0 = arith.constant 0 : i32
    %c0_i32_1 = arith.constant 0 : i32
    return %c0_i32, %c0_i32_0 : i32, i32
  }
  func.func @transform_2(%arg0: i32) -> (i32, i32) {
    %c0_i32 = arith.constant 0 : i32
    %c0_i32_0 = arith.constant 0 : i32
    %c0_i32_1 = arith.constant 0 : i32
    return %c0_i32, %c0_i32_0 : i32, i32
  }
  func.func @transform_3(%arg0: i32) -> (i32, i32) {
    %c0_i32 = arith.constant 0 : i32
    %c0_i32_0 = arith.constant 0 : i32
    %c0_i32_1 = arith.constant 0 : i32
    return %c0_i32, %c0_i32_0 : i32, i32
  }
  func.func @transform_4(%arg0: i32) -> (i32, i32) {
    %c0_i32 = arith.constant 0 : i32
    %c0_i32_0 = arith.constant 0 : i32
    %c0_i32_1 = arith.constant 0 : i32
    return %c0_i32, %c0_i32_0 : i32, i32
  }
  func.func @transform_5(%arg0: i32) -> (i32, i32) {
    %c0_i32 = arith.constant 0 : i32
    %c0_i32_0 = arith.constant 0 : i32
    %c0_i32_1 = arith.constant 0 : i32
    return %c0_i32, %c0_i32_0 : i32, i32
  }
  func.func @transform_6(%arg0: i32) -> (i32, i32) {
    %c0_i32 = arith.constant 0 : i32
    %c0_i32_0 = arith.constant 0 : i32
    %c0_i32_1 = arith.constant 0 : i32
    return %c0_i32, %c0_i32_0 : i32, i32
  }
  func.func @transform_7(%arg0: i32) -> (i32, i32) {
    %c0_i32 = arith.constant 0 : i32
    %c0_i32_0 = arith.constant 0 : i32
    %c0_i32_1 = arith.constant 0 : i32
    return %c0_i32, %c0_i32_0 : i32, i32
  }
  func.func @transform_8(%arg0: i32) -> (i32, i32, i32) {
    %c0_i32 = arith.constant 0 : i32
    %c0_i32_0 = arith.constant 0 : i32
    %c0_i32_1 = arith.constant 0 : i32
    return %arg0, %c0_i32, %c0_i32_0 : i32, i32, i32
  }
}

</mosaic_0001>

<bundles_post_ra>
// kernel: tpu_custom_call.1
= control target key start
LH: loop header
LB: loop body
LE: loop exit
PB: predicated region body
PF: predicated region fallthrough
CT: control target
= control target key end

     0   :  { %13 = vsyncpa [#allocation3], 0  ;;  %s2723_s0 = inlined_call_operand.vmem [shape: f32[24,8,10], index: 0, kind: input, shape index: {}]   ;;  %s2724_s1 = inlined_call_operand.vmem [shape: bf16[9,512], index: 1, kind: input, shape index: {}]   ;;  %s2725_s2 = inlined_call_operand.vmem [shape: f32[1,128], index: 2, kind: input, shape index: {}]   ;;  %s2726_s3 = inlined_call_operand.vmem [shape: bf16[128,128], index: 3, kind: input, shape index: {}]   ;;  %s2727_s4 = inlined_call_operand.vmem [shape: f32[1,128], index: 4, kind: input, shape index: {}]   ;;  %s2728_s5 = inlined_call_operand.vmem [shape: bf16[128,128], index: 5, kind: input, shape index: {}]   ;;  %s2729_s6 = inlined_call_operand.vmem [shape: f32[1,128], index: 6, kind: input, shape index: {}]   ;;  %s2730_s7 = inlined_call_operand.vmem [shape: f32[1,128], index: 7, kind: input, shape index: {}]   ;;  %s2731_s8 = inlined_call_operand.hbm [shape: f32[3,1,8], index: 8, kind: output, shape index: {}]  }
   0x1   :  { %15 = vsyncpa [#allocation3 + $0x1], 0  ;;  %s2406_s27 = smov 0   ;;  %s2408_s28 = smov 0  }
   0x2   :  { %s2410_s29 = smov 0   ;;  %s2412_s30 = smov 0  }
   0x3 LB: > { %s2427_s9 = sadd.s32 4294967295, %s2353_s30   ;;  %s1984_s10 = sadd.s32 4294967294, %s2353_s30   ;;  %s2353_s30 = sphi %s2412_s30, %s2737_s30   ;;  %s2349_s29 = sphi %s2410_s29, %s2736_s29   ;;  %s2345_s28 = sphi %s2408_s28, %s2735_s28   ;;  %s2341_s27 = sphi %s2406_s27, %s2734_s27  }
   0x4   : > { %s2431_s11 = sadd.s32 1, %s2353_s30   ;;  %s201_s12 = sadd.s32 1, %s2349_s29 }
   0x5   : > { %s198_s13 = ssub.s32 %s2353_s30, %s2431_s11  ;;  %p211_p0 = scmp.ne.s32.totalorder %s2349_s29, %s2345_s28 }
   0x6   : > { %p199_p1 = scmp.eq.s32.totalorder %s198_s13, 0  ;;  %p212_p2 = scmp.eq.s32.totalorder %s2427_s9, 2 }
   0x7   : > { %p217_p3 = scmp.ne.s32.totalorder %s2345_s28, %s2341_s27  ;;  %p218_p4 = scmp.eq.s32.totalorder %s1984_s10, 2 }
   0x8   : > { %s2442_s14 = scalar_select %p199_p1, %s2349_s29, %s201_s12  }
   0x9   : > { %p2444_p5 = por %p212_p2, %p211_p0  ;;  %p2448_p6 = por %p218_p4, %p217_p3 }
   0xa   : > { %p1987_p7 = scmp.ge.s32.totalorder %s2353_s30, 1  ;;  %p266_p8 = scmp.lt.s32.totalorder %s2353_s30, 4 }
   0xc   : > { %p267_p9 = pnand %p1987_p7, %p266_p8 }
   0xd   : > { %s1988_s17 = sshll.u32 (!%p267_p9), %s2427_s9, 3  ;;  %vm391_vm0 = vcmask (!%p267_p9), 1043456   ;;  %v2269_v0 = vld [vmem:[%s2724_s1 + $0x4] ss:$16 sps:$4 sm:$0x1f] (!%p267_p9)   ;;  %vm392_vm1 = vcmask (!%p267_p9), 1044480   ;;  %v577_v45 = vlaneseq (!%p267_p9) }
   0xe   : > { %270 = sbr.rel (%p267_p9) target bundleno = 1337 (0x539), region = 52  ;;  %p300_p10 = scmp.lt.s32.totalorder (!%p267_p9), %s1988_s17, 23  ;;  %v2355_v1 = vmov (!%p267_p9), 65535   ;;  %v2271_v4 = vld [vmem:[%s2724_s1 + $0xc] ss:$16 sps:$4 sm:$0x1f] (!%p267_p9)  }
   0xf   : > { %v393_v2 = vsel (!%p267_p9), %vm391_vm0, 4294967295, %v2355_v1  ;;  %v2356_v5 = vmov (!%p267_p9), 0   ;;  %v2273_v7 = vld [vmem:[%s2724_s1] ss:$16 sps:$4 sm:$0x1f] (!%p267_p9)   ;;  %vm378_vm2 = vcmask (!%p267_p9), 72704  }
  0x10   : > { %v394_v3 = vsel (!%p267_p9), %vm392_vm1, %v393_v2, 0  ;;  %439 = vmatprep.mubr.bf16.mxu0 (!%p267_p9), %v2356_v5  ;;  %512 = vmatprep.mubr.bf16.mxu1 (!%p267_p9), %v2356_v5  ;;  %v2274_v8 = vld [vmem:[%s2724_s1 + $0x8] ss:$16 sps:$4 sm:$0x1f] (!%p267_p9)   ;;  %v2358_v44 = vmov (!%p267_p9), 0.0   ;;  %vm2359_vm3 = vmmov (!%p267_p9), 0  }
  0x11   : > { %v399_v6 = vand.u32 (!%p267_p9), %v2269_v0, %v394_v3  ;;  %2267 = vset.pattern.permute.xlu0 (!%p267_p9), %v2356_v5  ;;  %2268 = vset.pattern.permute.xlu1 (!%p267_p9), %v2356_v5  ;;  %v405_v9 = vand.u32 (!%p267_p9), %v2271_v4, %v394_v3  ;;  %v396_v10 = vand.u32 (!%p267_p9), %v2273_v7, %v394_v3  ;;  %v2493_v46 = vand.u32 (!%p267_p9), 127, %v577_v45  ;;  %s297_s19 = sand.u32 (!%p267_p9), 1, %s2345_s28   ;;  %s2057_s20 = sshll.u32 (!%p267_p9), %s2427_s9, 4 }
  0x12   : > { %v402_v11 = vand.u32 (!%p267_p9), %v2274_v8, %v394_v3  ;;  %vm635_vm5 = vcmask (!%p267_p9), 64512   ;;  %vm1829_vm13 = vcmask (!%p267_p9), 1041409   ;;  %vm1831_vm14 = vcmask (!%p267_p9), 1042434   ;;  %s298_s21 = scalar_lea.vmem (!%p267_p9), [#allocation2], %s297_s19  ;;  %s2681_s25 = scalar_lea.hbm (!%p267_p9), %s2731_s8, %s2057_s20 }
  0x13   : > { %407 = vmatprep.subr.bf16.mxu0 (!%p267_p9), %v399_v6  ;;  %480 = vmatprep.subr.bf16.mxu1 (!%p267_p9), %v405_v9  ;;  %vm1833_vm15 = vcmask (!%p267_p9), 1043459   ;;  %vm1837_vm1 = vcmask (!%p267_p9), 1045509   ;;  %s1929_s22 = sshll.u32 (!%p267_p9), %s298_s21, 4  ;;  %s2360_s9 = smov (!%p267_p9), [#allocation2]   ;;  %s2683_s22 = int_to_ptr.vmem [resolvable:$true] %s1929_s22 }
  0x14   : > { %408 = vmatpush1.bf16.msra.mxu0 (!%p267_p9), %v396_v10  ;;  %481 = vmatpush1.bf16.msra.mxu1 (!%p267_p9), %v402_v11  ;;  %s2291_s10 = scalar_lea.vmem (!%p267_p9), %s2683_s22, 16  ;;  %s2295_s12 = sshll.u32 (!%p267_p9), %s2360_s9, 4  ;;  %s2296_s12 = int_to_ptr.vmem [resolvable:$false] %s2295_s12 }
  0x15   : > { %s2739_s17 = smov (!%p300_p10, %s1988_s17), 23  ;;  %2106 = vmatprep.subr.bf16.mxu1 %v2358_v44  ;;  %p2292_p11 = scmp.ne.s32.totalorder %s2683_s22, %s2291_s10 }
  0x16   : > { %s1989_s26 = sshll.u32 %s2739_s17, 3  ;;  %s2357_s17 = smov 127  }
  0x17   : > { %s303_s13 = scalar_lea.vmem %s2723_s0, %s1989_s26  ;;  %s1917_s26 = scalar_lea.sflag [#allocation3], %s297_s19 }
  0x18   : > { %v306_v12 = vld [vmem:[%s303_s13] sm:$0xff]  ;;  %v307_v13 = vld [vmem:[%s303_s13 + $0x8] sm:$0xff]  ;;  %v308_v14 = vld [vmem:[%s303_s13 + $0x10] sm:$0xff]  ;;  %p2293_p12 = pnand %p2292_p11, %p2444_p5  ;;  %p2298_p0 = scmp.lt.s32.totalorder %s2683_s22, %s2296_s12 }
  0x19   : > { %v2060_v15 = vpack.c.bf16 %v307_v13, %v306_v12  ;;  %v309_v16 = vld [vmem:[%s303_s13 + $0x18] sm:$0xff]  ;;  %v310_v17 = vld [vmem:[%s303_s13 + $0x20] sm:$0xff]  ;;  %v311_v18 = vld [vmem:[%s303_s13 + $0x28] sm:$0xff]  ;;  %v2209_v24 = vtrunc.f32 %v307_v13  ;;  %v2207_v25 = vtrunc.f32 %v306_v12  ;;  %v2211_v29 = vtrunc.f32 %v308_v14 }
  0x1a   : > { %v2062_v19 = vpack.c.bf16 %v311_v18, %v310_v17  ;;  %v312_v20 = vld [vmem:[%s303_s13 + $0x30] sm:$0xff]  ;;  %v313_v21 = vld [vmem:[%s303_s13 + $0x38] sm:$0xff]  ;;  %v2061_v22 = vpack.c.bf16 %v309_v16, %v308_v14  ;;  %v2213_v28 = vtrunc.f32 %v309_v16  ;;  %v2217_v30 = vtrunc.f32 %v311_v18  ;;  %p2294_p13 = pneg %p2293_p12  ;;  %s2297_s13 = scalar_lea.vmem %s2296_s12, 32 }
  0x1b   : > { %354 = vrot.lane.b32.xlu0 %v2060_v15, %s2357_s17  ;;  %v2063_v23 = vpack.c.bf16 %v313_v21, %v312_v20  ;;  %v2208_v26 = vcvt.f32.s32 %v2207_v25  ;;  %v2210_v27 = vcvt.f32.s32 %v2209_v24  ;;  %v2215_v31 = vtrunc.f32 %v310_v17  ;;  %p2299_p1 = scmp.lt.s32.totalorder %s2297_s13, %s2291_s10 }
  0x1c   : > { %358 = vrot.lane.b32.xlu1 %v2062_v19, %s2357_s17  ;;  %v2214_v32 = vcvt.f32.s32 %v2213_v28  ;;  %v2212_v33 = vcvt.f32.s32 %v2211_v29  ;;  %v2218_v34 = vcvt.f32.s32 %v2217_v30  ;;  %v2221_v35 = vtrunc.f32 %v313_v21 }
  0x1d   : > { %v2216_v36 = vcvt.f32.s32 %v2215_v31  ;;  %v2219_v37 = vtrunc.f32 %v312_v20  ;;  %p2300_p2 = por %p2299_p1, %p2298_p0 }
  0x1e   : > { %v2222_v38 = vcvt.f32.s32 %v2221_v35 }
  0x1f   : > { %356 = vrot.lane.b32.xlu0 %v2061_v22, %s2357_s17  ;;  %v2220_v39 = vcvt.f32.s32 %v2219_v37  ;;  %p2301_p3 = pnand %p2300_p2, %p2294_p13 }
  0x20   : > { %360 = vrot.lane.b32.xlu1 %v2063_v23, %s2357_s17 }
  0x23   : > { %580 = vperm.xlu0 %2267, %v2208_v26  }
  0x24   : > { %583 = vperm.xlu1 %2268, %v2210_v27  }
  0x27   : > { %589 = vperm.xlu0 %2267, %v2214_v32  }
  0x28   : > { %586 = vperm.xlu1 %2268, %v2212_v33  }
  0x2b   : > { %595 = vperm.xlu0 %2267, %v2218_v34  }
  0x2c   : > { %592 = vperm.xlu1 %2268, %v2216_v36  }
  0x2f   : > { %601 = vperm.xlu0 %2267, %v2222_v38  }
  0x30   : > { %598 = vperm.xlu1 %2268, %v2220_v39  }
  0x8d   : > { %v355_v40 = vpop.permute.xlu0 %354 }
  0x8e   : > { %1998 = vmatmul.mubr.msk.bf16.vlgmr.msra.gmra.mrb[0].mxu0 %vm378_vm2, %v355_v40  ;;  %2002 = vmatmul.mubr.msk.bf16.vlgmr.msra.gmra.mrb[0].mxu1 %vm378_vm2, %v355_v40  ;;  %v359_v42 = vpop.permute.xlu1 %358 }
  0x8f   : > { %449 = vmatprep.mubr.bf16.mxu0 %v2356_v5  ;;  %522 = vmatprep.mubr.bf16.mxu1 %v2356_v5 }
  0x91   : > { %v357_v41 = vpop.permute.xlu0 %356 }
  0x92   : > { %v361_v43 = vpop.permute.xlu1 %360 }
  0x96   : > { %1999 = vmatmul.mubr.msk.bf16.gmra.mrb[4].mxu0 %vm378_vm2, %v357_v41  ;;  %2003 = vmatmul.mubr.msk.bf16.gmra.mrb[4].mxu1 %vm378_vm2, %v357_v41 }
  0x97   : > { %459 = vmatprep.mubr.bf16.mxu0 %v2356_v5  ;;  %532 = vmatprep.mubr.bf16.mxu1 %v2356_v5 }
  0x9e   : > { %2000 = vmatmul.mubr.msk.bf16.gmra.mrb[8].mxu0 %vm378_vm2, %v359_v42  ;;  %2004 = vmatmul.mubr.msk.bf16.gmra.mrb[8].mxu1 %vm378_vm2, %v359_v42 }
  0x9f   : > { %469 = vmatprep.mubr.bf16.mxu0 %v2356_v5  ;;  %542 = vmatprep.mubr.bf16.mxu1 %v2356_v5 }
  0xa2   : > { %v581_v47 = vpop.permute.xlu0 %580 }
  0xa3   : > { %vm603_vm4 = vcmp.eq.s32.totalorder %v2493_v46, %v581_v47  ;;  %v584_v2 = vpop.permute.xlu1 %583 }
  0xa4   : > { %v2006_v50 = vsel %vm603_vm4, 1.0, %v2358_v44  ;;  %vm604_vm6 = vcmp.eq.s32.totalorder %v2493_v46, %v584_v2  ;;  %vm1914_vm4 = vcmask 57344  }
  0xa5   : > { %v627_v61 = vpack.c.bf16 %v2006_v50, %v2006_v50  ;;  %v2007_v6 = vsel %vm604_vm6, 1.0, %v2358_v44 }
  0xa6   : > { %2001 = vmatmul.mubr.msk.bf16.gmra.mrb[12].mxu0 %vm378_vm2, %v361_v43  ;;  %2005 = vmatmul.mubr.msk.bf16.gmra.mrb[12].mxu1 %vm378_vm2, %v361_v43  ;;  %v628_v16 = vpack.c.bf16 %v2007_v6, %v2007_v6  ;;  %v590_v35 = vpop.permute.xlu0 %589  ;;  %vm1839_vm2 = vcmask 1046534  }
  0xa7   : > { %680 = vmatprep.mubr.bf16.mxu0 %v2356_v5  ;;  %2108 = vmatprep.mubr.msk.bf16.mxu1 %vm2359_vm3, %v2358_v44  ;;  %v587_v21 = vpop.permute.xlu1 %586  ;;  %vm606_vm8 = vcmp.eq.s32.totalorder %v2493_v46, %v590_v35  ;;  %v2287_v35 = vld [vmem:[%s2728_s5 + $0x20] sm:$0xff]  }
  0xa8   : > { %vm605_vm7 = vcmp.eq.s32.totalorder %v2493_v46, %v587_v21  ;;  %v2009_v45 = vsel %vm606_vm8, 1.0, %v2358_v44 }
  0xa9   : > { %v2008_v27 = vsel %vm605_vm7, 1.0, %v2358_v44 }
  0xaa   : > { %v629_v34 = vpack.c.bf16 %v2008_v27, %v2008_v27  ;;  %v2280_v27 = vld [vmem:[%s2726_s3 + $0x28] sm:$0xff]  }
 0x161   : > { %v441_v48 = vpop.f32.mrb[0].mxu0  ;;  %v514_v49 = vpop.f32.mrb[0].mxu1 }
 0x162   : > { %v553_v51 = vpack.c.bf16 %v441_v48, %v441_v48  ;;  %v555_v52 = vpack.c.bf16 %v514_v49, %v514_v49  ;;  %v443_v53 = vpop.f32.mrb[1].mxu0  ;;  %v2497_v54 = vpop.f32.mrb[1].mxu1 }
 0x163   : > { %v554_v55 = vpack.c.bf16 %v443_v53, %v443_v53  ;;  %v445_v56 = vpop.f32.mrb[2].mxu0  ;;  %v518_v57 = vpop.f32.mrb[2].mxu1 }
 0x164   : > { %v640_v58 = vsel %vm391_vm0, %v553_v51, 0  ;;  %v646_v59 = vsel %vm391_vm0, %v555_v52, 0  ;;  %v558_v60 = vpack.c.bf16 %v518_v57, %v518_v57  ;;  %v447_v62 = vpop.f32.mrb[3].mxu0  ;;  %v2501_v63 = vpop.f32.mrb[3].mxu1  ;;  %v556_v0 = vpack.c.bf16 %v445_v56, %v445_v56 }
 0x165   : > { %v557_v1 = vpack.c.bf16 %v447_v62, %v447_v62  ;;  %2014 = vmatprep.subr.msk.bf16.mxu0 %vm391_vm0, %v554_v55  ;;  %2107 = vmatpush3.bf16.msra.mxu1 %v646_v59  ;;  %v630_v52 = vpack.c.bf16 %v2009_v45, %v2009_v45  ;;  %v593_v55 = vpop.permute.xlu1 %592  ;;  %v596_v62 = vpop.permute.xlu0 %595 }
 0x166   : > { %649 = vmatpush1.bf16.msra.mxu0 %v640_v58  ;;  %2112 = vmatprep.subr.bf16.mxu1 %v2358_v44  ;;  %v739_v3 = vsel %vm391_vm0, %v558_v60, 0  ;;  %v733_v4 = vsel %vm391_vm0, %v556_v0, 0  ;;  %vm607_vm9 = vcmp.eq.s32.totalorder %v2493_v46, %v593_v55  ;;  %vm608_vm10 = vcmp.eq.s32.totalorder %v2493_v46, %v596_v62  ;;  %v2639_v62 = vld [vmem:[%s2725_s2] ss:$0 sm:$0xff] }
 0x167   : > { %2017 = vmatprep.subr.msk.bf16.mxu0 %vm391_vm0, %v557_v1  ;;  %v2010_v58 = vsel %vm607_vm9, 1.0, %v2358_v44 }
 0x168   : > { %2109 = vmatmul.mubr.msk.bf16.vlgmr.msra.gmra.mrb[16].mxu1 %vm635_vm5, %v627_v61 }
 0x169   : > { %2015 = vmatmul.mubr.msk.bf16.vlgmr.msra.gmra.mrb[16].mxu0 %vm635_vm5, %v627_v61  ;;  %2113 = vmatpush3.bf16.msra.mxu1 %v739_v3  ;;  %v451_v7 = vpop.f32.mrb[4].mxu0  ;;  %v524_v8 = vpop.f32.mrb[4].mxu1  ;;  %v631_v61 = vpack.c.bf16 %v2010_v58, %v2010_v58 }
 0x16a   : > { %742 = vmatpush1.bf16.msra.mxu0 %v733_v4  ;;  %2114 = vmatprep.mubr.msk.bf16.mxu1 %vm2359_vm3, %v2358_v44  ;;  %v561_v9 = vpack.c.bf16 %v524_v8, %v524_v8  ;;  %v453_v10 = vpop.f32.mrb[5].mxu0  ;;  %v2514_v11 = vpop.f32.mrb[5].mxu1  ;;  %v559_v12 = vpack.c.bf16 %v451_v7, %v451_v7  ;;  %v2011_v4 = vsel %vm608_vm10, 1.0, %v2358_v44 }
 0x16b   : > { %773 = vmatprep.mubr.bf16.mxu0 %v2356_v5  ;;  %v560_v13 = vpack.c.bf16 %v453_v10, %v453_v10  ;;  %2118 = vmatprep.subr.bf16.mxu1 %v2358_v44  ;;  %v455_v14 = vpop.f32.mrb[6].mxu0  ;;  %v528_v15 = vpop.f32.mrb[6].mxu1  ;;  %v632_v8 = vpack.c.bf16 %v2011_v4, %v2011_v4 }
 0x16c   : > { %v457_v17 = vpop.f32.mrb[7].mxu0  ;;  %v2518_v18 = vpop.f32.mrb[7].mxu1  ;;  %v832_v19 = vsel %vm391_vm0, %v561_v9, 0  ;;  %v826_v20 = vsel %vm391_vm0, %v559_v12, 0  ;;  %v564_v30 = vpack.c.bf16 %v528_v15, %v528_v15  ;;  %v562_v33 = vpack.c.bf16 %v455_v14, %v455_v14 }
 0x16d   : > { %2020 = vmatprep.subr.msk.bf16.mxu0 %vm391_vm0, %v560_v13  ;;  %v563_v22 = vpack.c.bf16 %v457_v17, %v457_v17  ;;  %v599_v7 = vpop.permute.xlu1 %598  ;;  %v602_v15 = vpop.permute.xlu0 %601 }
 0x16e   : > { %v925_v36 = vsel %vm391_vm0, %v564_v30, 0  ;;  %v919_v38 = vsel %vm391_vm0, %v562_v33, 0  ;;  %vm609_vm11 = vcmp.eq.s32.totalorder %v2493_v46, %v599_v7  ;;  %vm610_vm12 = vcmp.eq.s32.totalorder %v2493_v46, %v602_v15  ;;  %v2275_v46 = vld [vmem:[%s2726_s3] sm:$0xff]   ;;  %v2285_v33 = vld [vmem:[%s2728_s5 + $0x10] sm:$0xff]  }
 0x16f   : > { %v2012_v13 = vsel %vm609_vm11, 1.0, %v2358_v44  ;;  %v2013_v21 = vsel %vm610_vm12, 1.0, %v2358_v44  ;;  %v2283_v30 = vld [vmem:[%s2728_s5] sm:$0xff]  }
 0x170   : > { %2115 = vmatmul.mubr.msk.bf16.vlgmr.msra.gmra.mrb[20].mxu1 %vm635_vm5, %v628_v16  ;;  %v633_v17 = vpack.c.bf16 %v2012_v13, %v2012_v13 }
 0x171   : > { %2018 = vmatmul.mubr.msk.bf16.vlgmr.msra.gmra.mrb[20].mxu0 %vm635_vm5, %v628_v16  ;;  %2119 = vmatpush3.bf16.msra.mxu1 %v832_v19  ;;  %v461_v23 = vpop.f32.mrb[8].mxu0  ;;  %v534_v24 = vpop.f32.mrb[8].mxu1 }
 0x172   : > { %835 = vmatpush1.bf16.msra.mxu0 %v826_v20  ;;  %2120 = vmatprep.mubr.msk.bf16.mxu1 %vm2359_vm3, %v2358_v44  ;;  %v463_v25 = vpop.f32.mrb[9].mxu0  ;;  %v2528_v26 = vpop.f32.mrb[9].mxu1  ;;  %v567_v41 = vpack.c.bf16 %v534_v24, %v534_v24  ;;  %v565_v47 = vpack.c.bf16 %v461_v23, %v461_v23  ;;  %v2276_v23 = vld [vmem:[%s2726_s3 + $0x8] sm:$0xff]   ;;  %v2278_v24 = vld [vmem:[%s2726_s3 + $0x18] sm:$0xff]  }
 0x173   : > { %866 = vmatprep.mubr.bf16.mxu0 %v2356_v5  ;;  %2124 = vmatprep.subr.bf16.mxu1 %v2358_v44  ;;  %v465_v28 = vpop.f32.mrb[10].mxu0  ;;  %v538_v29 = vpop.f32.mrb[10].mxu1  ;;  %v566_v37 = vpack.c.bf16 %v463_v25, %v463_v25  ;;  %v2279_v25 = vld [vmem:[%s2726_s3 + $0x20] sm:$0xff]  }
 0x174   : > { %2023 = vmatprep.subr.msk.bf16.mxu0 %vm391_vm0, %v563_v22  ;;  %v467_v31 = vpop.f32.mrb[11].mxu0  ;;  %v2534_v32 = vpop.f32.mrb[11].mxu1  ;;  %v1018_v53 = vsel %vm391_vm0, %v567_v41, 0  ;;  %v1012_v56 = vsel %vm391_vm0, %v565_v47, 0  ;;  %v570_v59 = vpack.c.bf16 %v538_v29, %v538_v29  ;;  %v568_v60 = vpack.c.bf16 %v465_v28, %v465_v28  ;;  %v2281_v28 = vld [vmem:[%s2726_s3 + $0x30] sm:$0xff]   ;;  %v2282_v29 = vld [vmem:[%s2726_s3 + $0x38] sm:$0xff]  }
 0x175   : > { %v569_v57 = vpack.c.bf16 %v467_v31, %v467_v31  ;;  %v634_v22 = vpack.c.bf16 %v2013_v21, %v2013_v21  ;;  %v2284_v31 = vld [vmem:[%s2728_s5 + $0x8] sm:$0xff]  }
 0x176   : > { %v1111_v0 = vsel %vm391_vm0, %v570_v59, 0  ;;  %v1105_v2 = vsel %vm391_vm0, %v568_v60, 0 }
 0x178   : > { %2121 = vmatmul.mubr.msk.bf16.vlgmr.msra.gmra.mrb[24].mxu1 %vm635_vm5, %v629_v34 }
 0x179   : > { %2021 = vmatmul.mubr.msk.bf16.vlgmr.msra.gmra.mrb[24].mxu0 %vm635_vm5, %v629_v34  ;;  %2125 = vmatpush3.bf16.msra.mxu1 %v925_v36  ;;  %v471_v39 = vpop.f32.mrb[12].mxu0  ;;  %v544_v40 = vpop.f32.mrb[12].mxu1  ;;  %v2286_v34 = vld [vmem:[%s2728_s5 + $0x18] sm:$0xff]  }
 0x17a   : > { %928 = vmatpush1.bf16.msra.mxu0 %v919_v38  ;;  %2126 = vmatprep.mubr.msk.bf16.mxu1 %vm2359_vm3, %v2358_v44  ;;  %v473_v42 = vpop.f32.mrb[13].mxu0  ;;  %v2543_v43 = vpop.f32.mrb[13].mxu1  ;;  %v573_v3 = vpack.c.bf16 %v544_v40, %v544_v40  ;;  %v571_v6 = vpack.c.bf16 %v471_v39, %v471_v39 }
 0x17b   : > { %959 = vmatprep.mubr.bf16.mxu0 %v2356_v5  ;;  %2130 = vmatprep.subr.bf16.mxu1 %v2358_v44  ;;  %v475_v48 = vpop.f32.mrb[14].mxu0  ;;  %v548_v49 = vpop.f32.mrb[14].mxu1  ;;  %v572_v1 = vpack.c.bf16 %v473_v42, %v473_v42 }
 0x17c   : > { %2026 = vmatprep.subr.msk.bf16.mxu0 %vm391_vm0, %v566_v37  ;;  %v477_v50 = vpop.f32.mrb[15].mxu0  ;;  %v2549_v51 = vpop.f32.mrb[15].mxu1  ;;  %v1204_v9 = vsel %vm391_vm0, %v573_v3, 0  ;;  %v1198_v10 = vsel %vm391_vm0, %v571_v6, 0  ;;  %v576_v14 = vpack.c.bf16 %v548_v49, %v548_v49  ;;  %v574_v16 = vpack.c.bf16 %v475_v48, %v475_v48 }
 0x17d   : > { %v575_v12 = vpack.c.bf16 %v477_v50, %v477_v50 }
 0x17e   : > { %v1297_v19 = vsel %vm391_vm0, %v576_v14, 0  ;;  %v1291_v20 = vsel %vm391_vm0, %v574_v16, 0 }
 0x180   : > { %2127 = vmatmul.mubr.msk.bf16.vlgmr.msra.gmra.mrb[28].mxu1 %vm635_vm5, %v630_v52 }
 0x181   : > { %2024 = vmatmul.mubr.msk.bf16.vlgmr.msra.gmra.mrb[28].mxu0 %vm635_vm5, %v630_v52  ;;  %2131 = vmatpush3.bf16.msra.mxu1 %v1018_v53 }
 0x182   : > { %1021 = vmatpush1.bf16.msra.mxu0 %v1012_v56  ;;  %2132 = vmatprep.mubr.msk.bf16.mxu1 %vm2359_vm3, %v2358_v44 }
 0x183   : > { %1052 = vmatprep.mubr.bf16.mxu0 %v2356_v5  ;;  %2136 = vmatprep.subr.bf16.mxu1 %v2358_v44 }
 0x184   : > { %2029 = vmatprep.subr.msk.bf16.mxu0 %vm391_vm0, %v569_v57 }
 0x188   : > { %2133 = vmatmul.mubr.msk.bf16.vlgmr.msra.gmra.mrb[32].mxu1 %vm635_vm5, %v631_v61 }
 0x189   : > { %2027 = vmatmul.mubr.msk.bf16.vlgmr.msra.gmra.mrb[32].mxu0 %vm635_vm5, %v631_v61  ;;  %2137 = vmatpush3.bf16.msra.mxu1 %v1111_v0 }
 0x18a   : > { %1114 = vmatpush1.bf16.msra.mxu0 %v1105_v2  ;;  %2138 = vmatprep.mubr.msk.bf16.mxu1 %vm2359_vm3, %v2358_v44 }
 0x18b   : > { %1145 = vmatprep.mubr.bf16.mxu0 %v2356_v5  ;;  %2142 = vmatprep.subr.bf16.mxu1 %v2358_v44 }
 0x18c   : > { %2032 = vmatprep.subr.msk.bf16.mxu0 %vm391_vm0, %v572_v1 }
 0x190   : > { %2139 = vmatmul.mubr.msk.bf16.vlgmr.msra.gmra.mrb[36].mxu1 %vm635_vm5, %v632_v8 }
 0x191   : > { %2030 = vmatmul.mubr.msk.bf16.vlgmr.msra.gmra.mrb[36].mxu0 %vm635_vm5, %v632_v8  ;;  %2143 = vmatpush3.bf16.msra.mxu1 %v1204_v9 }
 0x192   : > { %1207 = vmatpush1.bf16.msra.mxu0 %v1198_v10  ;;  %2144 = vmatprep.mubr.msk.bf16.mxu1 %vm2359_vm3, %v2358_v44 }
 0x193   : > { %1238 = vmatprep.mubr.bf16.mxu0 %v2356_v5  ;;  %2148 = vmatprep.subr.bf16.mxu1 %v2358_v44 }
 0x194   : > { %2035 = vmatprep.subr.msk.bf16.mxu0 %vm391_vm0, %v575_v12  ;;  %vm1835_vm0 = vcmask 1044484  }
 0x198   : > { %2145 = vmatmul.mubr.msk.bf16.vlgmr.msra.gmra.mrb[40].mxu1 %vm635_vm5, %v633_v17 }
 0x199   : > { %2033 = vmatmul.mubr.msk.bf16.vlgmr.msra.gmra.mrb[40].mxu0 %vm635_vm5, %v633_v17  ;;  %2149 = vmatpush3.bf16.msra.mxu1 %v1297_v19 }
 0x19a   : > { %1300 = vmatpush1.bf16.msra.mxu0 %v1291_v20  ;;  %2150 = vmatprep.mubr.msk.bf16.mxu1 %vm2359_vm3, %v2358_v44 }
 0x19b   : > { %1331 = vmatprep.mubr.bf16.mxu0 %v2356_v5  ;;  %2154 = vmatprep.subr.bf16.mxu0 %v2275_v46  ;;  %v2277_v5 = vld [vmem:[%s2726_s3 + $0x10] sm:$0xff]  }
 0x19c   : > { %2178 = vmatprep.subr.bf16.mxu1 %v2283_v30 }
 0x1a0   : > { %2151 = vmatmul.mubr.msk.bf16.vlgmr.msra.gmra.mrb[44].mxu1 %vm635_vm5, %v634_v22 }
 0x1a1   : > { %2036 = vmatmul.mubr.msk.bf16.vlgmr.msra.gmra.mrb[44].mxu0 %vm635_vm5, %v634_v22  ;;  %2179 = vmatpush3.bf16.msra.mxu1 %v2283_v30 }
 0x1a2   : > { %2155 = vmatpush3.bf16.msra.mxu0 %v2275_v46  ;;  %2180 = vmatprep.subr.bf16.mxu1 %v2284_v31 }
 0x1a3   : > { %2156 = vmatprep.subr.bf16.mxu0 %v2276_v23 }
 0x1a5   : > { %2181 = vmatpush3.bf16.msra.mxu1 %v2284_v31 }
 0x1a6   : > { %2157 = vmatpush3.bf16.msra.mxu0 %v2276_v23  ;;  %2182 = vmatprep.subr.bf16.mxu1 %v2285_v33 }
 0x1a7   : > { %2158 = vmatprep.subr.bf16.mxu0 %v2277_v5 }
 0x1a9   : > { %2183 = vmatpush3.bf16.msra.mxu1 %v2285_v33 }
 0x1aa   : > { %2159 = vmatpush3.bf16.msra.mxu0 %v2277_v5  ;;  %2184 = vmatprep.subr.bf16.mxu1 %v2286_v34 }
 0x1ab   : > { %2160 = vmatprep.subr.bf16.mxu0 %v2278_v24 }
 0x1ad   : > { %2185 = vmatpush3.bf16.msra.mxu1 %v2286_v34 }
 0x1ae   : > { %2161 = vmatpush3.bf16.msra.mxu0 %v2278_v24  ;;  %2186 = vmatprep.subr.bf16.mxu1 %v2287_v35 }
 0x1af   : > { %2162 = vmatprep.subr.bf16.mxu0 %v2279_v25 }
 0x1b1   : > { %2187 = vmatpush3.bf16.msra.mxu1 %v2287_v35 }
 0x1b2   : > { %2163 = vmatpush3.bf16.msra.mxu0 %v2279_v25 }
 0x1b3   : > { %2164 = vmatprep.subr.bf16.mxu0 %v2280_v27 }
 0x1b6   : > { %2165 = vmatpush3.bf16.msra.mxu0 %v2280_v27 }
 0x1b7   : > { %2166 = vmatprep.subr.bf16.mxu0 %v2281_v28 }
 0x1ba   : > { %2167 = vmatpush3.bf16.msra.mxu0 %v2281_v28 }
 0x1bb   : > { %2168 = vmatprep.subr.bf16.mxu0 %v2282_v29 }
 0x1be   : > { %2169 = vmatpush3.bf16.msra.mxu0 %v2282_v29 }
 0x1bf   : > { %2202 = vmatprep.subr.mxu0 %v2358_v44 }
 0x23b   : > { %v723_v36 = vpop.f32.mrb[16].mxu1 }
 0x23c   : > { %v682_v37 = vpop.f32.mrb[16].mxu0  ;;  %v2110_v38 = vpop.f32.mrb[17].mxu1  ;;  %v1396_v49 = vrot.slane %v723_v36, 1 }
 0x23d   : > { %v684_v39 = vpop.f32.mrb[17].mxu0  ;;  %v726_v40 = vpop.f32.mrb[18].mxu1 }
 0x23e   : > { %v1380_v41 = vrot.slane %v684_v39, 7  ;;  %v686_v42 = vpop.f32.mrb[18].mxu0  ;;  %v2111_v45 = vpop.f32.mrb[19].mxu1 }
 0x23f   : > { %v687_v47 = vpop.f32.mrb[19].mxu0 }
 0x240   : > { %v1388_v48 = vadd.f32 %v1380_v41, %v682_v37 }
 0x242   : > { %v1404_v50 = vadd.f32 %v1396_v49, %v1388_v48 }
 0x243   : > { %v816_v52 = vpop.f32.mrb[20].mxu1 }
 0x244   : > { %v1412_v53 = vadd.f32 %v1404_v50, %v2497_v54  ;;  %v775_v55 = vpop.f32.mrb[20].mxu0  ;;  %v2116_v56 = vpop.f32.mrb[21].mxu1  ;;  %v1397_v2 = vrot.slane %v816_v52, 1 }
 0x245   : > { %v777_v57 = vpop.f32.mrb[21].mxu0  ;;  %v819_v58 = vpop.f32.mrb[22].mxu1 }
 0x246   : > { %v1381_v59 = vrot.slane %v777_v57, 7  ;;  %v779_v60 = vpop.f32.mrb[22].mxu0  ;;  %v2117_v61 = vpop.f32.mrb[23].mxu1  ;;  %v1427_v3 = vadd.f32 %v2639_v62, %v1412_v53 }
 0x247   : > { %v780_v0 = vpop.f32.mrb[23].mxu0 }
 0x248   : > { %v1389_v1 = vadd.f32 %v1381_v59, %v775_v55  ;;  %v1435_v16 = vmul.f32 0.01, %v1427_v3 }
 0x24a   : > { %v1405_v4 = vadd.f32 %v1397_v2, %v1389_v1  ;;  %v1443_v46 = vmax.f32 %v1427_v3, %v1435_v16 }
 0x24b   : > { %v909_v6 = vpop.f32.mrb[24].mxu1 }
 0x24c   : > { %v1413_v54 = vadd.f32 %v1405_v4, %v2501_v63  ;;  %v868_v7 = vpop.f32.mrb[24].mxu0  ;;  %v2122_v8 = vpop.f32.mrb[25].mxu1  ;;  %v1398_v20 = vrot.slane %v909_v6, 1 }
 0x24d   : > { %v870_v9 = vpop.f32.mrb[25].mxu0  ;;  %v912_v10 = vpop.f32.mrb[26].mxu1 }
 0x24e   : > { %v1428_v12 = vadd.f32 %v2639_v62, %v1413_v54  ;;  %v1382_v13 = vrot.slane %v870_v9, 7  ;;  %v872_v14 = vpop.f32.mrb[26].mxu0  ;;  %v2123_v15 = vpop.f32.mrb[27].mxu1 }
 0x24f   : > { %v873_v17 = vpop.f32.mrb[27].mxu0 }
 0x250   : > { %v1390_v19 = vadd.f32 %v1382_v13, %v868_v7  ;;  %v1436_v21 = vmul.f32 0.01, %v1428_v12 }
 0x252   : > { %v1406_v22 = vadd.f32 %v1398_v20, %v1390_v19  ;;  %v1444_v23 = vmax.f32 %v1428_v12, %v1436_v21 }
 0x253   : > { %v1002_v5 = vpop.f32.mrb[28].mxu1 }
 0x254   : > { %v1414_v63 = vadd.f32 %v1406_v22, %v2514_v11  ;;  %v961_v24 = vpop.f32.mrb[28].mxu0  ;;  %v2128_v25 = vpop.f32.mrb[29].mxu1  ;;  %v1451_v27 = vpack.c.bf16 %v1444_v23, %v1443_v46  ;;  %v1399_v35 = vrot.slane %v1002_v5, 1 }
 0x255   : > { %v963_v28 = vpop.f32.mrb[29].mxu0  ;;  %v1005_v29 = vpop.f32.mrb[30].mxu1 }
 0x256   : > { %v1383_v30 = vrot.slane %v963_v28, 7  ;;  %v965_v31 = vpop.f32.mrb[30].mxu0  ;;  %v2129_v33 = vpop.f32.mrb[31].mxu1  ;;  %2170 = vmatprep.mubr.bf16.mxu0 %v1451_v27  ;;  %v1429_v37 = vadd.f32 %v2639_v62, %v1414_v63 }
 0x257   : > { %v966_v34 = vpop.f32.mrb[31].mxu0 }
 0x258   : > { %v1391_v36 = vadd.f32 %v1383_v30, %v961_v24  ;;  %v1437_v47 = vmul.f32 0.01, %v1429_v37 }
 0x25a   : > { %v1407_v38 = vadd.f32 %v1399_v35, %v1391_v36  ;;  %v1445_v58 = vmax.f32 %v1429_v37, %v1437_v47 }
 0x25b   : > { %v1095_v39 = vpop.f32.mrb[32].mxu1 }
 0x25c   : > { %v1415_v40 = vadd.f32 %v1407_v38, %v2518_v18  ;;  %v1054_v41 = vpop.f32.mrb[32].mxu0  ;;  %v2134_v11 = vpop.f32.mrb[33].mxu1  ;;  %v1400_v56 = vrot.slane %v1095_v39, 1 }
 0x25d   : > { %v1056_v42 = vpop.f32.mrb[33].mxu0  ;;  %v1098_v45 = vpop.f32.mrb[34].mxu1 }
 0x25e   : > { %v1430_v48 = vadd.f32 %v2639_v62, %v1415_v40  ;;  %v1384_v49 = vrot.slane %v1056_v42, 7  ;;  %v1058_v50 = vpop.f32.mrb[34].mxu0  ;;  %v2135_v52 = vpop.f32.mrb[35].mxu1 }
 0x25f   : > { %v1059_v53 = vpop.f32.mrb[35].mxu0 }
 0x260   : > { %v1438_v55 = vmul.f32 0.01, %v1430_v48  ;;  %v1392_v57 = vadd.f32 %v1384_v49, %v1054_v41 }
 0x262   : > { %v1408_v59 = vadd.f32 %v1400_v56, %v1392_v57  ;;  %v1446_v60 = vmax.f32 %v1430_v48, %v1438_v55  ;;  %v2288_v55 = vld [vmem:[%s2728_s5 + $0x28] sm:$0xff]  }
 0x263   : > { %v1188_v61 = vpop.f32.mrb[36].mxu1  ;;  %2188 = vmatprep.subr.bf16.mxu1 %v2288_v55 }
 0x264   : > { %v1416_v18 = vadd.f32 %v1408_v59, %v2528_v26  ;;  %v1147_v0 = vpop.f32.mrb[36].mxu0  ;;  %v2140_v1 = vpop.f32.mrb[37].mxu1  ;;  %v1452_v2 = vpack.c.bf16 %v1446_v60, %v1445_v58  ;;  %v1401_v9 = vrot.slane %v1188_v61, 1  ;;  %2189 = vmatpush3.bf16.msra.mxu1 %v2288_v55 }
 0x265   : > { %v1149_v3 = vpop.f32.mrb[37].mxu0  ;;  %v1191_v4 = vpop.f32.mrb[38].mxu1 }
 0x266   : > { %v1385_v6 = vrot.slane %v1149_v3, 7  ;;  %v1151_v54 = vpop.f32.mrb[38].mxu0  ;;  %v2141_v7 = vpop.f32.mrb[39].mxu1  ;;  %2171 = vmatmul.mubr.bf16.vlgmr.msra.gmra.mrb[48].mxu0 %v1452_v2  ;;  %v1431_v13 = vadd.f32 %v2639_v62, %v1416_v18 }
 0x267   : > { %v1152_v8 = vpop.f32.mrb[39].mxu0 }
 0x268   : > { %v1393_v10 = vadd.f32 %v1385_v6, %v1147_v0  ;;  %v1439_v23 = vmul.f32 0.01, %v1431_v13 }
 0x26a   : > { %v1409_v12 = vadd.f32 %v1401_v9, %v1393_v10  ;;  %v1447_v28 = vmax.f32 %v1431_v13, %v1439_v23 }
 0x26b   : > { %v1281_v14 = vpop.f32.mrb[40].mxu1 }
 0x26c   : > { %v1417_v15 = vadd.f32 %v1409_v12, %v2534_v32  ;;  %v1240_v16 = vpop.f32.mrb[40].mxu0  ;;  %v2146_v26 = vpop.f32.mrb[41].mxu1  ;;  %v1402_v63 = vrot.slane %v1281_v14, 1 }
 0x26d   : > { %v1242_v17 = vpop.f32.mrb[41].mxu0  ;;  %v1284_v19 = vpop.f32.mrb[42].mxu1 }
 0x26e   : > { %v1386_v20 = vrot.slane %v1242_v17, 7  ;;  %v1244_v21 = vpop.f32.mrb[42].mxu0  ;;  %v2147_v22 = vpop.f32.mrb[43].mxu1  ;;  %v1432_v46 = vadd.f32 %v2639_v62, %v1417_v15 }
 0x26f   : > { %v1245_v5 = vpop.f32.mrb[43].mxu0 }
 0x270   : > { %v1394_v24 = vadd.f32 %v1386_v20, %v1240_v16  ;;  %v1440_v25 = vmul.f32 0.01, %v1432_v46 }
 0x272   : > { %v1410_v27 = vadd.f32 %v1402_v63, %v1394_v24  ;;  %v1448_v29 = vmax.f32 %v1432_v46, %v1440_v25 }
 0x273   : > { %v1374_v30 = vpop.f32.mrb[44].mxu1 }
 0x274   : > { %v1418_v32 = vadd.f32 %v1410_v27, %v2543_v43  ;;  %v1333_v31 = vpop.f32.mrb[44].mxu0  ;;  %v2152_v33 = vpop.f32.mrb[45].mxu1  ;;  %v1453_v34 = vpack.c.bf16 %v1448_v29, %v1447_v28  ;;  %v1403_v41 = vrot.slane %v1374_v30, 1  ;;  %v2048_v28 = vld [vmem:[%s2729_s6] ss:$0 sm:$0xff] }
 0x275   : > { %v1335_v35 = vpop.f32.mrb[45].mxu0  ;;  %v1377_v36 = vpop.f32.mrb[46].mxu1 }
 0x276   : > { %v1387_v37 = vrot.slane %v1335_v35, 7  ;;  %v1337_v38 = vpop.f32.mrb[46].mxu0  ;;  %v2153_v39 = vpop.f32.mrb[47].mxu1  ;;  %2174 = vmatprep.mubr.bf16.mxu0 %v1453_v34  ;;  %v1433_v45 = vadd.f32 %v2639_v62, %v1418_v32 }
 0x277   : > { %v1338_v40 = vpop.f32.mrb[47].mxu0 }
 0x278   : > { %v1395_v11 = vadd.f32 %v1387_v37, %v1333_v31  ;;  %v1441_v43 = vmul.f32 0.01, %v1433_v45 }
 0x27a   : > { %v1411_v42 = vadd.f32 %v1403_v41, %v1395_v11  ;;  %v1449_v50 = vmax.f32 %v1433_v45, %v1441_v43 }
 0x27c   : > { %v1419_v47 = vadd.f32 %v1411_v42, %v2549_v51  ;;  %v2289_v51 = vld [vmem:[%s2728_s5 + $0x30] sm:$0xff]  }
 0x27d   : > { %2190 = vmatprep.subr.bf16.mxu1 %v2289_v51 }
 0x27e   : > { %v1434_v48 = vadd.f32 %v2639_v62, %v1419_v47  ;;  %2191 = vmatpush3.bf16.msra.mxu1 %v2289_v51  ;;  %v2290_v62 = vld [vmem:[%s2728_s5 + $0x38] sm:$0xff]  }
 0x27f   : > { %2192 = vmatprep.subr.bf16.mxu1 %v2290_v62 }
 0x280   : > { %v1442_v49 = vmul.f32 0.01, %v1434_v48 }
 0x282   : > { %v1450_v52 = vmax.f32 %v1434_v48, %v1442_v49  ;;  %2193 = vmatpush3.bf16.msra.mxu1 %v2290_v62 }
 0x284   : > { %v1454_v53 = vpack.c.bf16 %v1450_v52, %v1449_v50 }
 0x286   : > { %2175 = vmatmul.mubr.bf16.gmra.mrb[52].mxu0 %v1454_v53 }
 0x287   : > { %2204 = vmatprep.mubr.msk.f32.mxu0 %vm2359_vm3, %v2358_v44  ;;  %v2039_v44 = vld [vmem:[%s2727_s4] ss:$0 sm:$0xff]  ;;  %vm1841_vm3 = vcmask 1047559  }
 0x339   : > { %v2172_v56 = vpop.f32.mrb[48].mxu0 }
 0x33a   : > { %v1569_v57 = vadd.f32 %v2172_v56, %v2039_v44  ;;  %v1560_v58 = vpop.f32.mrb[49].mxu0 }
 0x33b   : > { %v1561_v59 = vadd.f32 %v2039_v44, %v1560_v58  ;;  %v2173_v60 = vpop.f32.mrb[50].mxu0 }
 0x33c   : > { %v1593_v61 = vmul.f32 0.01, %v1569_v57  ;;  %v1572_v18 = vadd.f32 %v2173_v60, %v2039_v44  ;;  %v1563_v0 = vpop.f32.mrb[51].mxu0 }
 0x33d   : > { %v1591_v1 = vmul.f32 0.01, %v1561_v59  ;;  %v1564_v2 = vadd.f32 %v2039_v44, %v1563_v0 }
 0x33e   : > { %v1594_v3 = vmul.f32 0.01, %v1572_v18  ;;  %v1601_v6 = vmax.f32 %v1569_v57, %v1593_v61 }
 0x33f   : > { %v1592_v4 = vmul.f32 0.01, %v1564_v2  ;;  %v1599_v7 = vmax.f32 %v1561_v59, %v1591_v1 }
 0x340   : > { %v1602_v54 = vmax.f32 %v1572_v18, %v1594_v3 }
 0x341   : > { %v1600_v8 = vmax.f32 %v1564_v2, %v1592_v4 }
 0x342   : > { %v1608_v9 = vpack.c.bf16 %v1602_v54, %v1601_v6 }
 0x343   : > { %v1607_v10 = vpack.c.bf16 %v1600_v8, %v1599_v7 }
 0x345   : > { %2194 = vmatprep.mubr.bf16.mxu1 %v1607_v10 }
 0x346   : > { %2195 = vmatmul.mubr.bf16.vlgmr.msra.gmra.mrb[48].mxu1 %v1608_v9 }
 0x359   : > { %v2176_v12 = vpop.f32.mrb[52].mxu0 }
 0x35a   : > { %v1585_v13 = vadd.f32 %v2176_v12, %v2039_v44  ;;  %v1576_v14 = vpop.f32.mrb[53].mxu0 }
 0x35b   : > { %v1577_v15 = vadd.f32 %v2039_v44, %v1576_v14  ;;  %v2177_v16 = vpop.f32.mrb[54].mxu0 }
 0x35c   : > { %v1597_v26 = vmul.f32 0.01, %v1585_v13  ;;  %v1588_v17 = vadd.f32 %v2177_v16, %v2039_v44  ;;  %v1579_v19 = vpop.f32.mrb[55].mxu0 }
 0x35d   : > { %v1595_v20 = vmul.f32 0.01, %v1577_v15  ;;  %v1580_v21 = vadd.f32 %v2039_v44, %v1579_v19 }
 0x35e   : > { %v1598_v22 = vmul.f32 0.01, %v1588_v17  ;;  %v1605_v23 = vmax.f32 %v1585_v13, %v1597_v26 }
 0x35f   : > { %v1596_v46 = vmul.f32 0.01, %v1580_v21  ;;  %v1603_v63 = vmax.f32 %v1577_v15, %v1595_v20 }
 0x360   : > { %v1606_v5 = vmax.f32 %v1588_v17, %v1598_v22 }
 0x361   : > { %v1604_v24 = vmax.f32 %v1580_v21, %v1596_v46 }
 0x362   : > { %v1610_v25 = vpack.c.bf16 %v1606_v5, %v1605_v23 }
 0x363   : > { %v1609_v27 = vpack.c.bf16 %v1604_v24, %v1603_v63 }
 0x365   : > { %2198 = vmatprep.mubr.bf16.mxu1 %v1609_v27 }
 0x366   : > { %2199 = vmatmul.mubr.bf16.gmra.mrb[52].mxu1 %v1610_v25 }
 0x419   : > { %v2196_v29 = vpop.f32.mrb[48].mxu1 }
 0x41a   : > { %v1725_v30 = vadd.f32 %v2196_v29, %v2048_v28  ;;  %v1716_v32 = vpop.f32.mrb[49].mxu1 }
 0x41b   : > { %v1717_v31 = vadd.f32 %v2048_v28, %v1716_v32  ;;  %v2197_v33 = vpop.f32.mrb[50].mxu1 }
 0x41c   : > { %v1749_v34 = vmul.f32 0.01, %v1725_v30  ;;  %v1728_v35 = vadd.f32 %v2197_v33, %v2048_v28  ;;  %v1719_v36 = vpop.f32.mrb[51].mxu1 }
 0x41d   : > { %v1747_v37 = vmul.f32 0.01, %v1717_v31  ;;  %v1720_v38 = vadd.f32 %v2048_v28, %v1719_v36 }
 0x41e   : > { %v1757_v39 = vmax.f32 %v1725_v30, %v1749_v34  ;;  %v1750_v40 = vmul.f32 0.01, %v1728_v35 }
 0x41f   : > { %v1755_v41 = vmax.f32 %v1717_v31, %v1747_v37  ;;  %v1748_v11 = vmul.f32 0.01, %v1720_v38 }
 0x420   : > { %v1775_v42 = vrot.slane %v1757_v39, 4  ;;  %v1758_v45 = vmax.f32 %v1728_v35, %v1750_v40 }
 0x421   : > { %v1763_v47 = vrot.slane %v1755_v41, 4  ;;  %v1756_v48 = vmax.f32 %v1720_v38, %v1748_v11 }
 0x422   : > { %v1776_v43 = vadd.f32 %v1775_v42, %v1757_v39  ;;  %v1781_v49 = vrot.slane %v1758_v45, 4 }
 0x423   : > { %v1764_v50 = vadd.f32 %v1763_v47, %v1755_v41  ;;  %v1769_v52 = vrot.slane %v1756_v48, 4 }
 0x424   : > { %v1777_v53 = vrot.slane %v1776_v43, 2  ;;  %v1782_v55 = vadd.f32 %v1781_v49, %v1758_v45 }
 0x425   : > { %v1765_v51 = vrot.slane %v1764_v50, 2  ;;  %v1770_v62 = vadd.f32 %v1769_v52, %v1756_v48 }
 0x426   : > { %v1778_v44 = vadd.f32 %v1777_v53, %v1776_v43  ;;  %v1783_v56 = vrot.slane %v1782_v55, 2 }
 0x427   : > { %v1766_v57 = vadd.f32 %v1765_v51, %v1764_v50  ;;  %v1771_v58 = vrot.slane %v1770_v62, 2 }
 0x428   : > { %v1779_v59 = vrot.slane %v1778_v44, 1  ;;  %v1784_v60 = vadd.f32 %v1783_v56, %v1782_v55 }
 0x429   : > { %v1767_v61 = vrot.slane %v1766_v57, 1  ;;  %v1772_v18 = vadd.f32 %v1771_v58, %v1770_v62 }
 0x42a   : > { %v1785_v0 = vrot.slane %v1784_v60, 1  ;;  %v1780_v3 = vadd.f32 %v1779_v59, %v1778_v44 }
 0x42b   : > { %v1768_v1 = vadd.f32 %v1767_v61, %v1766_v57  ;;  %v1773_v2 = vrot.slane %v1772_v18, 1 }
 0x42c   : > { %v1786_v4 = vadd.f32 %v1785_v0, %v1784_v60  ;;  %v1814_v8 = vmul.f32 0.125, %v1780_v3  ;;  %v1820_v60 = vld [vmem:[%s2730_s7] sm:$0x1] }
 0x42d   : > { %v1774_v6 = vadd.f32 %v1773_v2, %v1772_v18  ;;  %v1812_v54 = vmul.f32 0.125, %v1768_v1 }
 0x42e   : > { %v1815_v9 = vmul.f32 0.125, %v1786_v4 }
 0x42f   : > { %v1813_v7 = vmul.f32 0.125, %v1774_v6 }
 0x431   : > { %v1830_v10 = vsel %vm1829_vm13, %v1813_v7, %v1812_v54 }
 0x432   : > { %v1832_v12 = vsel %vm1831_vm14, %v1814_v8, %v1830_v10 }
 0x433   : > { %v1834_v13 = vsel %vm1833_vm15, %v1815_v9, %v1832_v12 }
 0x439   : > { %v2200_v14 = vpop.f32.mrb[52].mxu1 }
 0x43a   : > { %v1741_v15 = vadd.f32 %v2200_v14, %v2048_v28  ;;  %v1732_v16 = vpop.f32.mrb[53].mxu1 }
 0x43b   : > { %v1733_v26 = vadd.f32 %v2048_v28, %v1732_v16  ;;  %v2201_v17 = vpop.f32.mrb[54].mxu1 }
 0x43c   : > { %v1753_v19 = vmul.f32 0.01, %v1741_v15  ;;  %v1744_v20 = vadd.f32 %v2201_v17, %v2048_v28  ;;  %v1735_v21 = vpop.f32.mrb[55].mxu1 }
 0x43d   : > { %v1751_v22 = vmul.f32 0.01, %v1733_v26  ;;  %v1736_v46 = vadd.f32 %v2048_v28, %v1735_v21 }
 0x43e   : > { %v1761_v23 = vmax.f32 %v1741_v15, %v1753_v19  ;;  %v1754_v5 = vmul.f32 0.01, %v1744_v20 }
 0x43f   : > { %v1759_v63 = vmax.f32 %v1733_v26, %v1751_v22  ;;  %v1752_v24 = vmul.f32 0.01, %v1736_v46 }
 0x440   : > { %v1799_v25 = vrot.slane %v1761_v23, 4  ;;  %v1762_v27 = vmax.f32 %v1744_v20, %v1754_v5 }
 0x441   : > { %v1787_v29 = vrot.slane %v1759_v63, 4  ;;  %v1760_v30 = vmax.f32 %v1736_v46, %v1752_v24 }
 0x442   : > { %v1800_v32 = vadd.f32 %v1799_v25, %v1761_v23  ;;  %v1805_v31 = vrot.slane %v1762_v27, 4 }
 0x443   : > { %v1788_v33 = vadd.f32 %v1787_v29, %v1759_v63  ;;  %v1793_v34 = vrot.slane %v1760_v30, 4 }
 0x444   : > { %v1801_v35 = vrot.slane %v1800_v32, 2  ;;  %v1806_v36 = vadd.f32 %v1805_v31, %v1762_v27 }
 0x445   : > { %v1789_v37 = vrot.slane %v1788_v33, 2  ;;  %v1794_v38 = vadd.f32 %v1793_v34, %v1760_v30 }
 0x446   : > { %v1802_v39 = vadd.f32 %v1801_v35, %v1800_v32  ;;  %v1807_v40 = vrot.slane %v1806_v36, 2 }
 0x447   : > { %v1790_v41 = vadd.f32 %v1789_v37, %v1788_v33  ;;  %v1795_v28 = vrot.slane %v1794_v38, 2 }
 0x448   : > { %v1803_v11 = vrot.slane %v1802_v39, 1  ;;  %v1808_v42 = vadd.f32 %v1807_v40, %v1806_v36 }
 0x449   : > { %v1791_v45 = vrot.slane %v1790_v41, 1  ;;  %v1796_v47 = vadd.f32 %v1795_v28, %v1794_v38 }
 0x44a   : > { %v1809_v48 = vrot.slane %v1808_v42, 1  ;;  %v1804_v50 = vadd.f32 %v1803_v11, %v1802_v39 }
 0x44b   : > { %v1792_v43 = vadd.f32 %v1791_v45, %v1790_v41  ;;  %v1797_v49 = vrot.slane %v1796_v47, 1 }
 0x44c   : > { %v1810_v55 = vadd.f32 %v1809_v48, %v1808_v42  ;;  %v1818_v44 = vmul.f32 0.125, %v1804_v50 }
 0x44d   : > { %v1816_v52 = vmul.f32 0.125, %v1792_v43  ;;  %v1798_v53 = vadd.f32 %v1797_v49, %v1796_v47 }
 0x44e   : > { %v1819_v56 = vmul.f32 0.125, %v1810_v55 }
 0x44f   : > { %v1817_v51 = vmul.f32 0.125, %v1798_v53  ;;  %v1836_v62 = vsel %vm1835_vm0, %v1816_v52, %v1834_v13 }
 0x451   : > { %v1838_v57 = vsel %vm1837_vm1, %v1817_v51, %v1836_v62 }
 0x452   : > { %v1840_v58 = vsel %vm1839_vm2, %v1818_v44, %v1838_v57 }
 0x453   : > { %v1842_v59 = vsel %vm1841_vm3, %v1819_v56, %v1840_v58 }
 0x454   : > { %2203 = vmatpush3.xpose.msra.mxu0 %v1842_v59 }
 0x457   : > { %2205 = vmatmul.mubr.f32.vlgmr.msra.gmra.mrb[56].mxu0 %v1820_v60 }
 0x52a   : > { %v1910_v61 = vpop.f32.mrb[56].mxu0 }
 0x52b   : > { %1915 = vst.msk [vmem:[%s298_s21] sm:$0x1] %vm1914_vm4, %v1910_v61  ;;  %v2206_v18 = vpop.f32.mrb[57].mxu0 }
 0x52c   : > { %2304 = shalt.err (!%p2301_p3)
}
 0x52d   : > { %s2305_s17 = scalar_lea.hbm %s2681_s25, 16  ;;  %s2309_s20 = scalar_lea.hbm %s2731_s8, 48 }
 0x52e   : > { %p2306_p4 = scmp.ne.s32.totalorder %s2681_s25, %s2305_s17  ;;  %p2310_p9 = scmp.lt.u32.totalorder %s2681_s25, %s2731_s8 }
 0x52f   : > { %p2311_p10 = scmp.lt.u32.totalorder %s2309_s20, %s2305_s17  ;;  %p2313_p12 = scmp.lt.u32.totalorder %s2305_s17, %s2681_s25 }
 0x530   : > { %p2307_p7 = pnand %p2306_p4, %p2444_p5 }
 0x531   : > { %p2312_p11 = por %p2311_p10, %p2310_p9 }
 0x532   : > { %p2308_p8 = pneg %p2307_p7 }
 0x533   : > { %p2314_p13 = por %p2313_p12, %p2312_p11 }
 0x535   : > { %p2315_p0 = pnand %p2314_p13, %p2308_p8 }
 0x537   : > { %2318 = shalt.err (!%p2315_p0)
}
 0x538   : > { %2223 = dma.vmem_to_hbm [thread:$0]  (%p2444_p5), %s2683_s22, 16, %s2681_s25, %s1917_s26  }
 0x539 PF: > { %p2229_p1 = scmp.ge.s32.totalorder %s2353_s30, 2  ;;  %s1941_s24 = sand.u32 1, %s2341_s27  }
 0x53a   : > { %s1942_s10 = scalar_lea.sflag [#allocation3], %s1941_s24 }
 0x53b   : > { %p2226_p2 = pnand %p2229_p1, %p2448_p6 }
 0x53d   : > { %2336 = dma.done.wait (!%p2226_p2), %s1942_s10, 16  }
 0x53e   : > { %2338 = vsyncadd (!%p2226_p2), %s1942_s10, 4294967280  ;;  %p18_p3 = scmp.ge.s32.totalorder %s2431_s11, 5   ;;  %s2734_s27 = smov %s2345_s28 }
 0x53f   : > { %s2735_s28 = smov %s2349_s29  ;;  %s2736_s29 = smov %s2442_s14 }
 0x540   : > { %s2737_s30 = smov %s2431_s11  ;;  %20 = sbr.rel (!%p18_p3) target bundleno = 3 (0x3), region = 87 }
 0x547   :  { %1946 = vsyncpa [#allocation3], 1 }
 0x548   :  { %1948 = vsyncpa [#allocation3 + $0x1], 1 }

</bundles_post_ra>
